<compile_context>
chip_gen: v6e
topology: v6e:2x2x1
jax: 0.10.0
libtpu: 0.0.40
codegen_flags: <defaults>
</compile_context>

<pallas_src>
import jax
import jax.numpy as jnp
from jax.experimental import pallas as pl
from jax.experimental.pallas import tpu as pltpu


LANE = 128  # TPU lane width; the head output is padded to a lane-dense slab.


# ----------------------------------------------------------------------------
# Node graph machinery (mirrors the FlexMol BEModel API exactly)
# ----------------------------------------------------------------------------
class Node:
    def __init__(self, model_fn, parents=None, root_idx=None):
        self._model_fn = model_fn
        self._parents = parents or []
        self._root_idx = root_idx

    def is_root(self):
        return self._root_idx is not None

    def get_root_idx(self):
        return self._root_idx

    def get_parents(self):
        return self._parents

    def get_model(self):
        return self._model_fn


class BEModel:
    """JAX port of the PyTorch BEModel dynamic-graph forward pass."""

    def __init__(self, nodes):
        self.nodes = nodes
        self.layers, self.input_indices_sequence = self.layered_topological_sort()

    def layered_topological_sort(self):
        layers = []
        processed = set()
        input_indices_sequence = []
        current_layer = [node for node in self.nodes if node.is_root()]
        input_indices_sequence.append([[node.get_root_idx()] for node in current_layer])
        indices = {}
        processed.update(current_layer)
        current_index = len(input_indices_sequence[0])
        while current_layer:
            layers.append(current_layer)
            layer_input_indices = []
            next_layer = []
            for node in current_layer:
                indices[node] = current_index
                current_index += 1
            for node in self.nodes:
                if node not in processed and all(
                    (parent in processed for parent in node.get_parents())
                ):
                    layer_input_indices.append(
                        [indices[parent] for parent in node.get_parents()]
                    )
                    next_layer.append(node)
            input_indices_sequence.append(layer_input_indices)
            processed.update(next_layer)
            current_layer = next_layer
        return (layers, input_indices_sequence)

    def forward(self, *x):
        current_outputs = list(x)
        for layer, layer_input_indices in zip(self.layers, self.input_indices_sequence):
            next_outputs = []
            for node, input_indices in zip(layer, layer_input_indices):
                inputs = [current_outputs[index] for index in input_indices]
                if len(inputs) == 1:
                    if isinstance(inputs[0], tuple):
                        next_outputs.append(node.get_model()(*inputs[0]))
                    else:
                        next_outputs.append(node.get_model()(inputs[0]))
                else:
                    next_outputs.append(node.get_model()(*inputs))
            current_outputs.extend(next_outputs)
        return current_outputs[-1]

    def __call__(self, *x):
        return self.forward(*x)


# ----------------------------------------------------------------------------
# Concrete synthetic node graph.  The node model functions are pure jnp math;
# when called inside the Pallas kernel body they operate on VMEM-resident
# values and fuse into a single TPU kernel.
# ----------------------------------------------------------------------------
def make_node_graph(params):
    w0, b0 = params["w0"], params["b0"]      # (D0, H), (1, H)
    w1, b1 = params["w1"], params["b1"]      # (D1, H), (1, H)
    w2, b2 = params["w2"], params["b2"]      # (2H, H), (1, H)
    w3t, b3 = params["w3t"], params["b3"]    # (1, H),  (1, 1)

    def enc0(x):
        return jnp.maximum(
            jnp.dot(x, w0, preferred_element_type=jnp.float32) + b0, 0.0)

    def enc1(x):
        return jnp.maximum(
            jnp.dot(x, w1, preferred_element_type=jnp.float32) + b1, 0.0)

    def interaction(a, b):
        # Materialize the concat so a single K=2H (=128) MXU matmul is issued
        # instead of two K=64 passes.
        cat = jnp.concatenate([a, b], axis=-1)
        return jnp.maximum(
            jnp.dot(cat, w2, preferred_element_type=jnp.float32) + b2, 0.0)

    def head(h):
        # H->1 head as VPU multiply + XLU lane reduction: avoids a
        # 1/128-utilized MXU matmul and a lane-width-1 store.
        return jnp.sum(h * w3t, axis=-1, keepdims=True) + b3

    node0 = Node(enc0, root_idx=0)
    node1 = Node(enc1, root_idx=1)
    node2 = Node(interaction, parents=[node0, node1])
    node3 = Node(head, parents=[node2])
    return BEModel([node0, node1, node2, node3])


# ----------------------------------------------------------------------------
# Fused Pallas kernel: the whole BEModel node graph in one kernel body.
# ----------------------------------------------------------------------------
def _fused_graph_kernel(x0_ref, x1_ref, w0_ref, b0_ref, w1_ref, b1_ref,
                        w2_ref, b2_ref, w3t_ref, b3_ref, o_ref):
    params = {
        "w0": w0_ref[...], "b0": b0_ref[...],
        "w1": w1_ref[...], "b1": b1_ref[...],
        "w2": w2_ref[...], "b2": b2_ref[...],
        "w3t": w3t_ref[...], "b3": b3_ref[...],
    }
    # BEModel's layered-topological-sort dispatch runs at trace time; the
    # resulting compute (h0, h1, h2, head) stays entirely in VMEM/vregs and
    # fuses into this single kernel.
    model = make_node_graph(params)
    y = model(x0_ref[...], x1_ref[...])                       # (B, 1)
    # Lane-dense store: broadcast the head output across the 128 lanes.
    o_ref[...] = jnp.broadcast_to(y, o_ref.shape).astype(o_ref.dtype)


@jax.jit
def fused_forward(x0, x1, params):
    B = x0.shape[0]
    vmem = pl.BlockSpec(memory_space=pltpu.MemorySpace.VMEM)
    # Grid-less call: all operands (< 100 KiB total) live whole in VMEM.
    # NOTE: at large batch, add a batch grid axis marked "parallel" (v7x 2-TC
    # sharding, 64 MiB VMEM budget) and feed bf16 MXU inputs on v6e/v7x.
    padded = pl.pallas_call(
        _fused_graph_kernel,
        out_shape=jax.ShapeDtypeStruct((B, LANE), jnp.float32),
        in_specs=[vmem] * 10,
        out_specs=vmem,
    )(
        x0, x1,
        params["w0"], params["b0"],
        params["w1"], params["b1"],
        params["w2"], params["b2"],
        params["w3t"], params["b3"],
    )
    # Narrow the lane-padded slab to the module's (B, 1) output outside the
    # kernel (keeps the in-kernel store unmasked / lane-dense).
    return padded[:, :1]


# ----------------------------------------------------------------------------
# Deterministic parameter construction + example run
# ----------------------------------------------------------------------------
def _init_linear(key, d_in, d_out):
    kw, kb = jax.random.split(key)
    scale = 1.0 / jnp.sqrt(jnp.float32(d_in))
    w = jax.random.uniform(kw, (d_in, d_out), jnp.float32, -scale, scale)
    b = jax.random.uniform(kb, (d_out,), jnp.float32, -scale, scale)
    return w, b


if __name__ == "__main__":
    B, D0, D1, H = 8, 32, 48, 64

    key = jax.random.PRNGKey(0)
    k0, k1, k2, k3, kx0, kx1 = jax.random.split(key, 6)

    w0, b0 = _init_linear(k0, D0, H)       # encoder 0 (e.g. drug fingerprint)
    w1, b1 = _init_linear(k1, D1, H)       # encoder 1 (e.g. protein features)
    w2, b2 = _init_linear(k2, 2 * H, H)    # interaction: Linear(2H -> H)
    w3, b3 = _init_linear(k3, H, 1)        # prediction head: Linear(H -> 1)

    # Hoisted once: biases as broadcast-ready (1, H) rows; the H->1 head
    # weight stored as a (1, H) lane vector for the in-kernel VPU reduction.
    params = {
        "w0": w0, "b0": b0.reshape(1, H),
        "w1": w1, "b1": b1.reshape(1, H),
        "w2": w2, "b2": b2.reshape(1, H),
        "w3t": w3.reshape(1, H), "b3": b3.reshape(1, 1),
    }

    x0 = jax.random.normal(kx0, (B, D0), jnp.float32)
    x1 = jax.random.normal(kx1, (B, D1), jnp.float32)

    out = fused_forward(x0, x1, params)
    out = jax.block_until_ready(out)

    # Reference 1: the very same BEModel graph executor run as plain JAX ops
    # outside the kernel (validates that the fused kernel == graph dispatch).
    ref_graph = make_node_graph(params)(x0, x1)

    # Reference 2: the classic unfused formulation.
    h0 = jnp.maximum(x0 @ w0 + b0, 0.0)
    h1 = jnp.maximum(x1 @ w1 + b1, 0.0)
    h2 = jnp.maximum(jnp.concatenate([h0, h1], axis=-1) @ w2 + b2, 0.0)
    ref_classic = h2 @ w3 + b3

    assert out.shape == (B, 1)
    assert jnp.allclose(out, ref_graph, atol=1e-4, rtol=1e-4)
    assert jnp.allclose(out, ref_classic, atol=1e-4, rtol=1e-4)

    print("KERNEL_OK")
</pallas_src>

<mosaic_0001>
module attributes {stable_mosaic.version = 11 : i64} {
  func.func @_fused_graph_kernel(%arg0: memref<8x32xf32, #tpu.memory_space<vmem>>, %arg1: memref<8x48xf32, #tpu.memory_space<vmem>>, %arg2: memref<32x64xf32, #tpu.memory_space<vmem>>, %arg3: memref<1x64xf32, #tpu.memory_space<vmem>>, %arg4: memref<48x64xf32, #tpu.memory_space<vmem>>, %arg5: memref<1x64xf32, #tpu.memory_space<vmem>>, %arg6: memref<128x64xf32, #tpu.memory_space<vmem>>, %arg7: memref<1x64xf32, #tpu.memory_space<vmem>>, %arg8: memref<1x64xf32, #tpu.memory_space<vmem>>, %arg9: memref<1x1xf32, #tpu.memory_space<vmem>>, %arg10: memref<8x128xf32, #tpu.memory_space<vmem>>) attributes {dimension_semantics = [], scalar_prefetch = 0 : i64, scratch_operands = 0 : i64, tpu.core_type = #tpu.core_type<tc>} {
    %c0 = arith.constant 0 : index
    %c0_0 = arith.constant 0 : index
    %0 = vector.load %arg2[%c0, %c0_0] : memref<32x64xf32, #tpu.memory_space<vmem>>, vector<32x64xf32>
    %c0_1 = arith.constant 0 : index
    %c0_2 = arith.constant 0 : index
    %1 = vector.load %arg3[%c0_1, %c0_2] : memref<1x64xf32, #tpu.memory_space<vmem>>, vector<1x64xf32>
    %c0_3 = arith.constant 0 : index
    %c0_4 = arith.constant 0 : index
    %2 = vector.load %arg4[%c0_3, %c0_4] : memref<48x64xf32, #tpu.memory_space<vmem>>, vector<48x64xf32>
    %c0_5 = arith.constant 0 : index
    %c0_6 = arith.constant 0 : index
    %3 = vector.load %arg5[%c0_5, %c0_6] : memref<1x64xf32, #tpu.memory_space<vmem>>, vector<1x64xf32>
    %c0_7 = arith.constant 0 : index
    %c0_8 = arith.constant 0 : index
    %4 = vector.load %arg6[%c0_7, %c0_8] : memref<128x64xf32, #tpu.memory_space<vmem>>, vector<128x64xf32>
    %c0_9 = arith.constant 0 : index
    %c0_10 = arith.constant 0 : index
    %5 = vector.load %arg7[%c0_9, %c0_10] : memref<1x64xf32, #tpu.memory_space<vmem>>, vector<1x64xf32>
    %c0_11 = arith.constant 0 : index
    %c0_12 = arith.constant 0 : index
    %6 = vector.load %arg8[%c0_11, %c0_12] : memref<1x64xf32, #tpu.memory_space<vmem>>, vector<1x64xf32>
    %c0_13 = arith.constant 0 : index
    %c0_14 = arith.constant 0 : index
    %7 = vector.load %arg9[%c0_13, %c0_14] : memref<1x1xf32, #tpu.memory_space<vmem>>, vector<1x1xf32>
    %c0_15 = arith.constant 0 : index
    %c0_16 = arith.constant 0 : index
    %8 = vector.load %arg0[%c0_15, %c0_16] : memref<8x32xf32, #tpu.memory_space<vmem>>, vector<8x32xf32>
    %c0_17 = arith.constant 0 : index
    %c0_18 = arith.constant 0 : index
    %9 = vector.load %arg1[%c0_17, %c0_18] : memref<8x48xf32, #tpu.memory_space<vmem>>, vector<8x48xf32>
    %cst = arith.constant dense<0.000000e+00> : vector<8x64xf32>
    %10 = tpu.matmul %8, %0, %cst {dimension_numbers = #tpu.dot_dimension_numbers<[1], [0], [0], [1], [0, 0, 1, 1], [], []>} : vector<8x32xf32>, vector<32x64xf32>, vector<8x64xf32> -> vector<8x64xf32>
    %11 = vector.broadcast %1 : vector<1x64xf32> to vector<8x64xf32>
    %12 = arith.addf %10, %11 : vector<8x64xf32>
    %cst_19 = arith.constant 0.000000e+00 : f32
    %13 = vector.broadcast %cst_19 : f32 to vector<8x64xf32>
    %14 = arith.maximumf %12, %13 : vector<8x64xf32>
    %cst_20 = arith.constant dense<0.000000e+00> : vector<8x64xf32>
    %15 = tpu.matmul %9, %2, %cst_20 {dimension_numbers = #tpu.dot_dimension_numbers<[1], [0], [0], [1], [0, 0, 1, 1], [], []>} : vector<8x48xf32>, vector<48x64xf32>, vector<8x64xf32> -> vector<8x64xf32>
    %16 = vector.broadcast %3 : vector<1x64xf32> to vector<8x64xf32>
    %17 = arith.addf %15, %16 : vector<8x64xf32>
    %cst_21 = arith.constant 0.000000e+00 : f32
    %18 = vector.broadcast %cst_21 : f32 to vector<8x64xf32>
    %19 = arith.maximumf %17, %18 : vector<8x64xf32>
    %20 = tpu.concatenate %14, %19 in 1 : vector<8x64xf32>, vector<8x64xf32> -> vector<8x128xf32>
    %cst_22 = arith.constant dense<0.000000e+00> : vector<8x64xf32>
    %21 = tpu.matmul %20, %4, %cst_22 {dimension_numbers = #tpu.dot_dimension_numbers<[1], [0], [0], [1], [0, 0, 1, 1], [], []>} : vector<8x128xf32>, vector<128x64xf32>, vector<8x64xf32> -> vector<8x64xf32>
    %22 = vector.broadcast %5 : vector<1x64xf32> to vector<8x64xf32>
    %23 = arith.addf %21, %22 : vector<8x64xf32>
    %cst_23 = arith.constant 0.000000e+00 : f32
    %24 = vector.broadcast %cst_23 : f32 to vector<8x64xf32>
    %25 = arith.maximumf %23, %24 : vector<8x64xf32>
    %26 = vector.broadcast %6 : vector<1x64xf32> to vector<8x64xf32>
    %27 = arith.mulf %25, %26 : vector<8x64xf32>
    %cst_24 = arith.constant dense<0.000000e+00> : vector<8xf32>
    %28 = vector.multi_reduction <add>, %27, %cst_24 [1] : vector<8x64xf32> to vector<8xf32>
    %29 = vector.shape_cast %28 : vector<8xf32> to vector<8x1xf32>
    %30 = vector.broadcast %7 : vector<1x1xf32> to vector<8x1xf32>
    %31 = arith.addf %29, %30 : vector<8x1xf32>
    %32 = vector.shape_cast %31 : vector<8x1xf32> to vector<8x1xf32>
    %33 = vector.broadcast %32 : vector<8x1xf32> to vector<8x128xf32>
    %c0_25 = arith.constant 0 : index
    %c0_26 = arith.constant 0 : index
    %34 = vector.load %arg10[%c0_25, %c0_26] : memref<8x128xf32, #tpu.memory_space<vmem>>, vector<8x128xf32>
    tpu.vector_store %arg10[%c0_25, %c0_26], %33 {strides = array<i32>} : memref<8x128xf32, #tpu.memory_space<vmem>>, vector<8x128xf32>,
    return
  }
}

</mosaic_0001>

<bundles_post_ra>
// kernel: fused_forward.1
= control target key start
LH: loop header
LB: loop body
LE: loop exit
PB: predicated region body
PF: predicated region fallthrough
CT: control target
= control target key end

     0   :  { %v445_v0 = vmov 0.0   ;;  %vm446_vm0 = vmmov 0   ;;  %vm76_vm1 = vcmask 261120   ;;  %vm157_vm2 = vcmask 392192   ;;  %s447_s23 = smov 64   ;;  %s640_s2 = inlined_call_operand.vmem [shape: f32[32,64], index: 2, kind: input, shape index: {}]   ;;  %s641_s0 = inlined_call_operand.vmem [shape: f32[8,32], index: 0, kind: input, shape index: {}]   ;;  %s642_s4 = inlined_call_operand.vmem [shape: f32[48,64], index: 4, kind: input, shape index: {}]   ;;  %s643_s1 = inlined_call_operand.vmem [shape: f32[8,48], index: 1, kind: input, shape index: {}]   ;;  %s644_s6 = inlined_call_operand.vmem [shape: f32[128,64], index: 6, kind: input, shape index: {}]   ;;  %s645_s5 = inlined_call_operand.vmem [shape: f32[1,64], index: 5, kind: input, shape index: {}]   ;;  %s646_s3 = inlined_call_operand.vmem [shape: f32[1,64], index: 3, kind: input, shape index: {}]   ;;  %s647_s9 = inlined_call_operand.<no memory space> [shape: f32[1,1], index: 9, kind: input, shape index: {}]   ;;  %s648_s7 = inlined_call_operand.vmem [shape: f32[1,64], index: 7, kind: input, shape index: {}]   ;;  %s649_s8 = inlined_call_operand.vmem [shape: f32[1,64], index: 8, kind: input, shape index: {}]   ;;  %s650_s10 = inlined_call_operand.vmem [shape: f32[8,128], index: 10, kind: output, shape index: {}]  }
   0x1   :  { %378 = vmatprep.subr.mxu1 %v445_v0  ;;  %v40_v1 = vld [vmem:[%s640_s2 + $0x18] sm:$0xff]  ;;  %v39_v2 = vld [vmem:[%s640_s2 + $0x10] sm:$0xff]  ;;  %386 = vmatprep.mubr.msk.f32.mxu1 %vm446_vm0, %v445_v0  ;;  %v38_v3 = vld [vmem:[%s640_s2 + $0x8] sm:$0xff]  ;;  %vm236_vm3 = vcmask 523264   ;;  %v15_v41 = vstv %s647_s9  ;;  %v448_v50 = vmov 0  }
   0x2   :  { %379 = vmatpush3.msra.mxu1 %v40_v1  ;;  %404 = vmatprep.subr.mxu0 %v445_v0  ;;  %v37_v4 = vld [vmem:[%s640_s2] sm:$0xff]  ;;  %v47_v6 = vld [vmem:[%s642_s4 + $0x28] sm:$0xff]  ;;  %v45_v8 = vld [vmem:[%s642_s4 + $0x18] sm:$0xff]  ;;  %16 = vst [vmem:[#allocation2] sm:$0x1] %v15_v41 }
   0x3   :  { %380 = vmatprep.subr.mxu1 %v445_v0  ;;  %436 = vmatprep.mubr.msk.f32.mxu0 %vm446_vm0, %v445_v0  ;;  %v68_v5 = vld [vmem:[%s641_s0] sm:$0xff]  ;;  %v44_v9 = vld [vmem:[%s642_s4 + $0x10] sm:$0xff]  ;;  %v43_v10 = vld [vmem:[%s642_s4 + $0x8] sm:$0xff] }
   0x4   :  { %381 = vmatpush3.msra.mxu1 %v39_v2  ;;  %v46_v7 = vld [vmem:[%s642_s4 + $0x20] sm:$0xff]  ;;  %v64_v13 = vld [vmem:[%s644_s6 + $0x78] sm:$0xff]  ;;  %v63_v14 = vld [vmem:[%s644_s6 + $0x70] sm:$0xff]  ;;  %443 = vset.pattern.permute.xlu1 %v448_v50 }
   0x5   :  { %382 = vmatprep.subr.mxu1 %v445_v0  ;;  %v42_v11 = vld [vmem:[%s642_s4] sm:$0xff]  ;;  %405 = vmatpush3.msra.mxu0 %v64_v13  ;;  %v62_v15 = vld [vmem:[%s644_s6 + $0x68] sm:$0xff]  ;;  %v60_v17 = vld [vmem:[%s644_s6 + $0x58] sm:$0xff] }
   0x6   :  { %383 = vmatpush3.msra.mxu1 %v38_v3  ;;  %v69_v12 = vld [vmem:[%s643_s1] sm:$0xff]  ;;  %406 = vmatprep.subr.mxu0 %v445_v0  ;;  %v59_v18 = vld [vmem:[%s644_s6 + $0x50] sm:$0xff]  ;;  %v58_v19 = vld [vmem:[%s644_s6 + $0x48] sm:$0xff] }
   0x7   :  { %384 = vmatprep.subr.mxu1 %v445_v0  ;;  %407 = vmatpush3.msra.mxu0 %v63_v14  ;;  %v61_v16 = vld [vmem:[%s644_s6 + $0x60] sm:$0xff]  ;;  %v56_v21 = vld [vmem:[%s644_s6 + $0x38] sm:$0xff]  ;;  %v55_v22 = vld [vmem:[%s644_s6 + $0x30] sm:$0xff] }
   0x8   :  { %385 = vmatpush3.msra.mxu1 %v37_v4  ;;  %408 = vmatprep.subr.mxu0 %v445_v0  ;;  %v57_v20 = vld [vmem:[%s644_s6 + $0x40] sm:$0xff]  ;;  %v54_v23 = vld [vmem:[%s644_s6 + $0x28] sm:$0xff]  ;;  %v52_v25 = vld [vmem:[%s644_s6 + $0x18] sm:$0xff] }
   0x9   :  { %387 = vmatmul.mubr.msk.f32.vlgmr.msra.gmra.mxu1 %vm76_vm1, %v68_v5  ;;  %389 = vmatprep.subr.mxu1 %v445_v0  ;;  %v53_v24 = vld [vmem:[%s644_s6 + $0x20] sm:$0xff]  ;;  %v51_v26 = vld [vmem:[%s644_s6 + $0x10] sm:$0xff]  ;;  %v50_v27 = vld [vmem:[%s644_s6 + $0x8] sm:$0xff] }
   0xa   :  { %390 = vmatpush3.msra.mxu1 %v47_v6  ;;  %401 = vmatprep.mubr.msk.f32.mxu1 %vm446_vm0, %v445_v0  ;;  %v49_v30 = vld [vmem:[%s644_s6] sm:$0xff] }
   0xb   :  { %391 = vmatprep.subr.mxu1 %v445_v0  ;;  %409 = vmatpush3.msra.mxu0 %v62_v15  ;;  %v344_v31 = vld [vmem:[%s645_s5] ss:$0 sm:$0xff] }
   0xc   :  { %392 = vmatpush3.msra.mxu1 %v46_v7  ;;  %410 = vmatprep.subr.mxu0 %v445_v0  ;;  %v342_v36 = vld [vmem:[%s646_s3] ss:$0 sm:$0xff] }
   0xd   :  { %393 = vmatprep.subr.mxu1 %v445_v0  ;;  %411 = vmatpush3.msra.mxu0 %v61_v16  ;;  %v346_v42 = vld [vmem:[%s648_s7] ss:$0 sm:$0xff] }
   0xe   :  { %394 = vmatpush3.msra.mxu1 %v45_v8  ;;  %412 = vmatprep.subr.mxu0 %v445_v0  ;;  %v347_v46 = vld [vmem:[%s649_s8] ss:$0 sm:$0xff] }
   0xf   :  { %395 = vmatprep.subr.mxu1 %v445_v0  ;;  %413 = vmatpush3.msra.mxu0 %v60_v17  ;;  %v348_v51 = vld [vmem:[#allocation2] ss:$0 sm:$0xff] }
  0x10   :  { %396 = vmatpush3.msra.mxu1 %v44_v9  ;;  %414 = vmatprep.subr.mxu0 %v445_v0 }
  0x11   :  { %397 = vmatprep.subr.mxu1 %v445_v0  ;;  %415 = vmatpush3.msra.mxu0 %v59_v18 }
  0x12   :  { %398 = vmatpush3.msra.mxu1 %v43_v10  ;;  %416 = vmatprep.subr.mxu0 %v445_v0 }
  0x13   :  { %399 = vmatprep.subr.mxu1 %v445_v0  ;;  %417 = vmatpush3.msra.mxu0 %v58_v19 }
  0x14   :  { %400 = vmatpush3.msra.mxu1 %v42_v11  ;;  %418 = vmatprep.subr.mxu0 %v445_v0 }
  0x15   :  { %402 = vmatmul.mubr.msk.f32.vlgmr.msra.gmra.mxu1 %vm157_vm2, %v69_v12  ;;  %419 = vmatpush3.msra.mxu0 %v57_v20 }
  0x16   :  { %420 = vmatprep.subr.mxu0 %v445_v0  ;;  %444 = vset.pattern.permute.xlu0 %v448_v50 }
  0x17   :  { %421 = vmatpush3.msra.mxu0 %v56_v21 }
  0x18   :  { %422 = vmatprep.subr.mxu0 %v445_v0 }
  0x19   :  { %423 = vmatpush3.msra.mxu0 %v55_v22 }
  0x1a   :  { %424 = vmatprep.subr.mxu0 %v445_v0 }
  0x1b   :  { %425 = vmatpush3.msra.mxu0 %v54_v23 }
  0x1c   :  { %426 = vmatprep.subr.mxu0 %v445_v0 }
  0x1d   :  { %427 = vmatpush3.msra.mxu0 %v53_v24 }
  0x1e   :  { %428 = vmatprep.subr.mxu0 %v445_v0 }
  0x1f   :  { %429 = vmatpush3.msra.mxu0 %v52_v25 }
  0x20   :  { %430 = vmatprep.subr.mxu0 %v445_v0 }
  0x21   :  { %431 = vmatpush3.msra.mxu0 %v51_v26 }
  0x22   :  { %432 = vmatprep.subr.mxu0 %v445_v0 }
  0x23   :  { %433 = vmatpush3.msra.mxu0 %v50_v27 }
  0x24   :  { %434 = vmatprep.subr.mxu0 %v445_v0 }
  0x25   :  { %435 = vmatpush3.msra.mxu0 %v49_v30 }
  0xc9   :  { %v146_v28 = vpop.f32.mrf.mxu1 }
  0xca   :  { %v147_v37 = vadd.f32 %v342_v36, %v146_v28 }
  0xcb   :  { %v388_v29 = vpop.f32.mrf.mxu1 }
  0xcc   :  { %v150_v38 = vmax.f32 %v147_v37, 0.0 }
  0xd5   :  { %v227_v32 = vpop.f32.mrf.mxu1 }
  0xd6   :  { %v228_v33 = vadd.f32 %v344_v31, %v227_v32 }
  0xd7   :  { %v403_v34 = vpop.f32.mrf.mxu1 }
  0xd8   :  { %v231_v35 = vmax.f32 %v228_v33, 0.0 }
  0xda   :  { %233 = vrot.lane.b32.xlu0 %v231_v35, %s447_s23 }
 0x14c   :  { %v234_v39 = vpop.permute.xlu0 %233 }
 0x14d   :  { %v237_v40 = vsel %vm236_vm3, %v150_v38, %v234_v39 }
 0x14e   :  { %437 = vmatmul.mubr.f32.vlgmr.msra.gmra.mxu0 %v237_v40 }
 0x20e   :  { %v310_v43 = vpop.f32.mrf.mxu0 }
 0x20f   :  { %v311_v44 = vadd.f32 %v346_v42, %v310_v43 }
 0x210   :  { %v438_v45 = vpop.f32.mrf.mxu0 }
 0x211   :  { %v314_v47 = vmax.f32 %v311_v44, 0.0 }
 0x213   :  { %v321_v48 = vmul.f32 %v347_v46, %v314_v47 }
 0x215   :  { %v322_v49 = vsel %vm236_vm3, %v321_v48, 0.0 }
 0x216   :  { %323 = vadd.xlane.f32.xlu0 %v322_v49 }
 0x29f   :  { %v324_v52 = vpop.xlane.xlu0 %323 }
 0x2a0   :  { %v331_v53 = vadd.f32 %v348_v51, %v324_v52 }
 0x2a2   :  { %334 = vperm.xlu1 %443, %v331_v53  }
 0x31d   :  { %v335_v54 = vpop.permute.xlu1 %334 }
 0x31e   :  { %337 = vst [vmem:[%s650_s10] sm:$0xff] %v335_v54 }

</bundles_post_ra>
